<compile_context>
chip_gen: v6e
topology: v6e:2x2x1
jax: 0.10.0
libtpu: 0.0.40
codegen_flags: <defaults>
</compile_context>

<pallas_src>
import math

import jax
import jax.numpy as jnp
from jax.experimental import pallas as pl
from jax.experimental.pallas import tpu as pltpu

LANES = 128
MAX_ALIGN = 32  # sublane alignment covering int8/fp8 packing (>= 8 f32, 16 bf16)


def _round_up(a: int, b: int) -> int:
    return (a + b - 1) // b * b


def _vmem_budget_and_limit():
    """Generation-aware per-step tile budget and scoped-VMEM limit."""
    try:
        cap = int(pltpu.get_tpu_info().vmem_capacity_bytes)
    except Exception:
        cap = 64 << 20                     # conservative (v7x per-TC physical)
    budget = min(cap // 4, 24 << 20)       # all in-flight (double-buffered) tiles
    limit = min(cap // 2, 64 << 20)        # handed to Mosaic via vmem_limit_bytes
    return budget, limit


def make_positional_encoding(d_model: int, max_len: int = 1000) -> jnp.ndarray:
    """Deterministic buffer init, identical to the PyTorch __init__. Shape (1, max_len, d_model)."""
    position = jnp.arange(0, max_len, dtype=jnp.float32)[:, None]
    div_term = jnp.exp(
        jnp.arange(0, d_model, 2, dtype=jnp.float32) * (-math.log(10000.0) / d_model)
    )
    pe = jnp.zeros((max_len, d_model), dtype=jnp.float32)
    pe = pe.at[:, 0::2].set(jnp.sin(position * div_term))
    pe = pe.at[:, 1::2].set(jnp.cos(position * div_term))
    return pe[None, :, :]


def _pe_add_kernel(x_ref, pe_ref, o_ref):
    # x_ref/o_ref: (B, tr, 128) (batch-folded) or (tr, 128) (squeezed batch-grid path);
    # pe_ref: (tr, 128).  jnp broadcasting covers both cases.
    o_ref[...] = x_ref[...] + pe_ref[...]


def positional_encoding_forward(x: jnp.ndarray, pe_lanes: jnp.ndarray, max_len: int,
                                *, force_pallas: bool = False) -> jnp.ndarray:
    """x: (B, S, D); pe_lanes: lane-dense resident table (rows, 128). Returns x + pe[:, :S]."""
    B, S, D = x.shape
    if S > max_len:
        raise ValueError(f"sequence length {S} exceeds positional-encoding max_len {max_len}")

    if pe_lanes.dtype != x.dtype:
        # Only hit when the module was initialized with a different dtype than the activations.
        pe_lanes = pe_lanes.astype(x.dtype)

    SD = S * D

    # Tiny inputs: fixed pallas_call overhead dwarfs the data movement; let XLA fuse the add.
    if not force_pallas and x.size < (1 << 15):
        pe_sl = pe_lanes.reshape(-1)[:SD].reshape(1, S, D)
        return x + pe_sl

    itemsize = jnp.dtype(x.dtype).itemsize
    align = max(8, 32 // itemsize)             # 8 f32 / 16 bf16 / 32 int8-fp8
    budget, vmem_limit = _vmem_budget_and_limit()

    # Lane-dense fold: pad the flattened per-batch row to a multiple of align*128 so every
    # row tile (and the pe BlockSpec) is sublane-aligned; padded tail is sliced off at the end.
    SDp = _round_up(SD, align * LANES)
    Rp = SDp // LANES
    pad = SDp - SD

    x_flat = x.reshape(B, SD)
    if pad:
        x_flat = jnp.pad(x_flat, ((0, 0), (0, pad)))
    xv = x_flat.reshape(B, Rp, LANES)

    def row_tile(bytes_per_row: int) -> int:
        tr = budget // max(bytes_per_row, 1)
        if tr >= Rp:
            return Rp                          # full extent (Rp is a multiple of align)
        return max(align, (tr // align) * align)

    # Batch-folded per-step VMEM: x + out blocks (B, tr, 128), pe block (tr, 128), x2 buffers.
    folded_row_bytes = 2 * LANES * itemsize * (2 * B + 1)
    fold_batch = (budget // folded_row_bytes) >= align

    if fold_batch:
        tr = row_tile(folded_row_bytes)
        # Give the (only) grid axis >= 2 steps when possible so v7x can use both TensorCores.
        if Rp >= 2 * align and pl.cdiv(Rp, tr) < 2:
            tr = _round_up(pl.cdiv(Rp, 2), align)
        grid = (pl.cdiv(Rp, tr),)
        out = pl.pallas_call(
            _pe_add_kernel,
            out_shape=jax.ShapeDtypeStruct((B, Rp, LANES), x.dtype),
            grid=grid,
            in_specs=[
                pl.BlockSpec((B, tr, LANES), lambda si: (0, si, 0)),
                pl.BlockSpec((tr, LANES), lambda si: (si, 0)),     # windows into resident table
            ],
            out_specs=pl.BlockSpec((B, tr, LANES), lambda si: (0, si, 0)),
            compiler_params=pltpu.CompilerParams(
                dimension_semantics=("parallel",),
                vmem_limit_bytes=vmem_limit,
            ),
        )(xv, pe_lanes)
    else:
        # Large-B fallback: (seq_tile, batch) grid, batch innermost so each pe tile is
        # DMA'd once per seq tile; both axes independent -> both "parallel" (v7x sharding).
        tr = row_tile(6 * LANES * itemsize)
        grid = (pl.cdiv(Rp, tr), B)
        out = pl.pallas_call(
            _pe_add_kernel,
            out_shape=jax.ShapeDtypeStruct((B, Rp, LANES), x.dtype),
            grid=grid,
            in_specs=[
                pl.BlockSpec((pl.Squeezed(), tr, LANES), lambda si, b: (b, si, 0)),
                pl.BlockSpec((tr, LANES), lambda si, b: (si, 0)),  # independent of batch
            ],
            out_specs=pl.BlockSpec((pl.Squeezed(), tr, LANES), lambda si, b: (b, si, 0)),
            compiler_params=pltpu.CompilerParams(
                dimension_semantics=("parallel", "parallel"),
                vmem_limit_bytes=vmem_limit,
            ),
        )(xv, pe_lanes)

    out = out.reshape(B, Rp * LANES)
    if pad:
        out = out[:, :SD]
    return out.reshape(B, S, D)


class PositionalEncoding:
    """JAX/Pallas port of the PyTorch module (same __init__ formula, same forward)."""

    def __init__(self, d_model: int, max_len: int = 1000, dtype=jnp.float32):
        self.d_model = d_model
        self.max_len = max_len
        self.pe = make_positional_encoding(d_model, max_len)        # (1, max_len, d_model), f32
        # Lane-dense resident table in the activation dtype, padded once to 32*128 elements
        # so every sublane-aligned row tile is a legal BlockSpec window.  Note: casting the
        # table (e.g. to bf16) before the add matches module-dtype PyTorch behavior.
        flat = self.pe[0].astype(dtype).reshape(-1)
        padded = _round_up(flat.shape[0], MAX_ALIGN * LANES)
        if padded != flat.shape[0]:
            flat = jnp.pad(flat, (0, padded - flat.shape[0]))
        self.pe_lanes = flat.reshape(padded // LANES, LANES)

    def __call__(self, x: jnp.ndarray, *, force_pallas: bool = False) -> jnp.ndarray:
        return positional_encoding_forward(x, self.pe_lanes, self.max_len,
                                           force_pallas=force_pallas)


if __name__ == "__main__":
    # Small shapes consistent with the module's forward: (batch, seq, d_model).
    B, S, D = 2, 8, 32
    MAX_LEN = 1000

    key = jax.random.PRNGKey(0)
    x = jax.random.normal(key, (B, S, D), dtype=jnp.float32)

    module = PositionalEncoding(D, MAX_LEN, dtype=x.dtype)
    # Force the Pallas path at this tiny demo size (the wrapper would otherwise
    # dispatch to a plain fused XLA add).
    out = jax.block_until_ready(module(x, force_pallas=True))
    ref = x + module.pe[:, :S, :]
    assert out.shape == (B, S, D)
    assert jnp.allclose(out, ref, atol=1e-6, rtol=1e-6)

    # Also exercise a d_model that is not a multiple of 128 (lane-dense pad + slice path).
    D2 = 20
    module2 = PositionalEncoding(D2, MAX_LEN, dtype=jnp.float32)
    x2 = jax.random.normal(jax.random.PRNGKey(1), (B, S, D2), dtype=jnp.float32)
    out2 = jax.block_until_ready(module2(x2, force_pallas=True))
    assert jnp.allclose(out2, x2 + module2.pe[:, :S, :], atol=1e-6, rtol=1e-6)

    print("KERNEL_OK")
</pallas_src>

<mosaic_0001>
module attributes {stable_mosaic.version = 11 : i64} {
  func.func @_pe_add_kernel(%arg0: i32, %arg1: memref<2x8x128xf32, #tpu.memory_space<vmem>>, %arg2: memref<8x128xf32, #tpu.memory_space<vmem>>, %arg3: memref<2x8x128xf32, #tpu.memory_space<vmem>>) attributes {dimension_semantics = [#tpu.dimension_semantics<parallel>], iteration_bounds = array<i64: 1>, scalar_prefetch = 0 : i64, scratch_operands = 0 : i64, tpu.core_type = #tpu.core_type<tc>, window_params = [{transform_indices = @transform_0, window_bounds = array<i64: 2, 8, 128>}, {transform_indices = @transform_1, window_bounds = array<i64: 8, 128>}, {transform_indices = @transform_2, window_bounds = array<i64: 2, 8, 128>}]} {
    %c0 = arith.constant 0 : index
    %c0_0 = arith.constant 0 : index
    %c0_1 = arith.constant 0 : index
    %0 = vector.load %arg1[%c0, %c0_0, %c0_1] : memref<2x8x128xf32, #tpu.memory_space<vmem>>, vector<2x8x128xf32>
    %c0_2 = arith.constant 0 : index
    %c0_3 = arith.constant 0 : index
    %1 = vector.load %arg2[%c0_2, %c0_3] : memref<8x128xf32, #tpu.memory_space<vmem>>, vector<8x128xf32>
    %2 = vector.shape_cast %1 : vector<8x128xf32> to vector<1x8x128xf32>
    %3 = vector.broadcast %2 : vector<1x8x128xf32> to vector<2x8x128xf32>
    %4 = arith.addf %0, %3 : vector<2x8x128xf32>
    %c0_4 = arith.constant 0 : index
    %c0_5 = arith.constant 0 : index
    %c0_6 = arith.constant 0 : index
    %5 = vector.load %arg3[%c0_4, %c0_5, %c0_6] : memref<2x8x128xf32, #tpu.memory_space<vmem>>, vector<2x8x128xf32>
    tpu.vector_store %arg3[%c0_4, %c0_5, %c0_6], %4 {strides = array<i32>} : memref<2x8x128xf32, #tpu.memory_space<vmem>>, vector<2x8x128xf32>,
    return
  }
  func.func @transform_0(%arg0: i32) -> (i32, i32, i32) {
    %c0_i32 = arith.constant 0 : i32
    %c0_i32_0 = arith.constant 0 : i32
    %c0_i32_1 = arith.constant 0 : i32
    return %c0_i32, %arg0, %c0_i32_0 : i32, i32, i32
  }
  func.func @transform_1(%arg0: i32) -> (i32, i32) {
    %c0_i32 = arith.constant 0 : i32
    %c0_i32_0 = arith.constant 0 : i32
    return %arg0, %c0_i32 : i32, i32
  }
  func.func @transform_2(%arg0: i32) -> (i32, i32, i32) {
    %c0_i32 = arith.constant 0 : i32
    %c0_i32_0 = arith.constant 0 : i32
    %c0_i32_1 = arith.constant 0 : i32
    return %c0_i32, %arg0, %c0_i32_0 : i32, i32, i32
  }
}

</mosaic_0001>

<bundles_post_ra>
// kernel: tpu_custom_call.1
= control target key start
LH: loop header
LB: loop body
LE: loop exit
PB: predicated region body
PF: predicated region fallthrough
CT: control target
= control target key end

     0   :  { %7 = vsyncpa [#allocation3], 0  ;;  %s169_s0 = inlined_call_operand.hbm [shape: f32[2,8,128], index: 0, kind: input, shape index: {}]   ;;  %s170_s1 = inlined_call_operand.hbm [shape: f32[256,128], index: 1, kind: input, shape index: {}]   ;;  %s171_s2 = inlined_call_operand.hbm [shape: f32[2,8,128], index: 2, kind: output, shape index: {}]  }
   0x1   :  { %8 = vsyncpa [#allocation6], 0 }
   0x2   :  { %9 = vsyncpa [#allocation4], 0  ;;  %s134_s9 = smov [#allocation2]  }
   0x3   :  { %s15_s10 = sshll.u32 %s134_s9, 4  ;;  %s16_s10 = int_to_ptr.vmem [resolvable:$true] %s15_s10 }
   0x4   :  { %s76_s11 = scalar_lea.vmem %s16_s10, 256  ;;  %p81_p1 = scmp.lt.s32.totalorder %s16_s10, %s16_s10 }
   0x5   :  { %p77_p0 = scmp.ne.s32.totalorder %s16_s10, %s76_s11  ;;  %p82_p2 = scmp.lt.s32.totalorder %s76_s11, %s76_s11 }
   0x7   :  { %p83_p3 = por %p82_p2, %p81_p1 }
   0x9   :  { %p84_p4 = pnand %p83_p3, %p77_p0 }
   0xb   :  { %87 = shalt.err (!%p84_p4)
}
   0xc   :  { %s135_s12 = smov 128   ;;  %s136_s13 = smov 8  }
   0xd   :  { %21 = dma.hbm_to_vmem [thread:$0]  %s169_s0, 256, %s16_s10, [#allocation3], %s135_s12, %s135_s12, %s136_s13  }
   0xe   :  { %s137_s16 = smov [#allocation5]  }
   0xf   :  { %s28_s17 = sshll.u32 %s137_s16, 4  ;;  %s29_s17 = int_to_ptr.vmem [resolvable:$true] %s28_s17 }
  0x10   :  { %s96_s18 = scalar_lea.vmem %s29_s17, 128  ;;  %p101_p6 = scmp.lt.s32.totalorder %s29_s17, %s29_s17 }
  0x11   :  { %p97_p5 = scmp.ne.s32.totalorder %s29_s17, %s96_s18  ;;  %p102_p7 = scmp.lt.s32.totalorder %s96_s18, %s96_s18 }
  0x13   :  { %p103_p8 = por %p102_p7, %p101_p6 }
  0x15   :  { %p104_p9 = pnand %p103_p8, %p97_p5 }
  0x17   :  { %107 = shalt.err (!%p104_p9)
}
  0x18   :  { %31 = dma.hbm_to_vmem [thread:$0]  %s170_s1, 128, %s29_s17, [#allocation6]  }
  0x19   :  { %128 = dma.done.wait [#allocation3], 256  }
  0x1a   :  { %129 = vsyncadd [#allocation3], 4294967040 }
  0x1b   :  { %130 = dma.done.wait [#allocation6], 128  }
  0x1c   :  { %131 = vsyncadd [#allocation6], 4294967168  ;;  %s138_s21 = smov [#allocation7]   ;;  %v38_v0 = vld [vmem:[#allocation2] sm:$0xff]  ;;  %v40_v1 = vld [vmem:[#allocation5] sm:$0xff] }
  0x1d   :  { %s50_s0 = sshll.u32 %s138_s21, 4  ;;  %v39_v2 = vld [vmem:[#allocation2 + $0x8] sm:$0xff]  ;;  %v41_v3 = vadd.f32 %v40_v1, %v38_v0  ;;  %s51_s0 = int_to_ptr.vmem [resolvable:$true] %s50_s0 }
  0x1e   :  { %v42_v4 = vadd.f32 %v40_v1, %v39_v2  ;;  %s108_s22 = scalar_lea.vmem %s51_s0, 256  ;;  %p113_p11 = scmp.lt.s32.totalorder %s51_s0, %s51_s0 }
  0x1f   :  { %43 = vst [vmem:[#allocation7] sm:$0xff] %v41_v3  ;;  %p109_p10 = scmp.ne.s32.totalorder %s51_s0, %s108_s22  ;;  %p114_p12 = scmp.lt.s32.totalorder %s108_s22, %s108_s22 }
  0x20   :  { %44 = vst [vmem:[#allocation7 + $0x8] sm:$0xff] %v42_v4 }
  0x21   :  { %p115_p13 = por %p114_p12, %p113_p11 }
  0x23   :  { %p116_p0 = pnand %p115_p13, %p109_p10 }
  0x25   :  { %119 = shalt.err (!%p116_p0)
}
  0x26   :  { %56 = dma.vmem_to_hbm [thread:$0]  %s51_s0, 256, %s171_s2, [#allocation4], %s135_s12, %s135_s12, %s136_s13  }
  0x27   :  { %132 = dma.done.wait [#allocation4], 256  }
  0x28   :  { %133 = vsyncadd [#allocation4], 4294967040 }
  0x29   :  { %60 = vsyncpa [#allocation3], 1 }
  0x2a   :  { %61 = vsyncpa [#allocation6], 1 }
  0x2b   :  { %62 = vsyncpa [#allocation4], 1 }

</bundles_post_ra>
